<compile_context>
chip_gen: v7x
topology: tpu7x:2x2x1
jax: 0.10.0
libtpu: 0.0.40
codegen_flags: <defaults>
</compile_context>

<pallas_src>
import functools
import math

import jax
import jax.numpy as jnp
from jax import lax
from jax.experimental import pallas as pl
from jax.experimental.pallas import tpu as pltpu

# Plain Python floats so they are inlined as constants in the kernel.
_FLT_MIN = 1.1754943508222875e-38
_LOG_FLT_MIN = math.log(_FLT_MIN)  # ~ -87.3365


def _softmax_focal_loss_kernel(x_ref, t_ref, w_ref, loss_ref, *,
                               gamma: float, bf16_compute: bool):
    t = t_ref[...]                           # (T, 1) int32; -1 == pad/ignore
    w = w_ref[...]                           # (T, 1) f32; already = -alpha * weight[target]

    use_bf16 = bf16_compute and x_ref.dtype == jnp.bfloat16
    x = x_ref[...] if use_bf16 else x_ref[...].astype(jnp.float32)   # (T, C)

    # Numerically-stable log-softmax at the target class.  The exp tile is
    # reused for both the denominator and the target-class numerator, so the
    # per-row p does not need a second full exp pass (EUP is the scarce unit
    # on v7x): p = num * rcp(denom), logp = (x_t - m) - log(denom).
    m = jnp.max(x, axis=1, keepdims=True)                              # (T, 1)
    e = jnp.exp(x - m)                                                 # (T, C)
    denom = jnp.sum(e, axis=1, keepdims=True, dtype=jnp.float32)       # (T, 1) f32

    col = lax.broadcasted_iota(jnp.int32, x.shape, 1)                  # (T, C)
    onehot = col == t                                                  # (T, C) bool
    # where-select (not multiply) so garbage rows in an overhanging last
    # logits block cannot poison anything via NaN * 0.
    x_t = jnp.sum(jnp.where(onehot, x, 0.0), axis=1, keepdims=True,
                  dtype=jnp.float32)                                   # (T, 1)
    num = jnp.sum(jnp.where(onehot, e, 0.0), axis=1, keepdims=True,
                  dtype=jnp.float32)                                   # (T, 1)

    p = num * pl.reciprocal(denom, approx=True)                        # EUP vrcp
    logp = (x_t - m.astype(jnp.float32)) - jnp.log(denom)
    logp = jnp.maximum(logp, _LOG_FLT_MIN)      # matches log(max(p, FLT_MIN))
    omp = jnp.maximum(1.0 - p, 0.0)

    g = float(gamma)
    if g == 2.0:                                  # common case: no jnp.power
        pow_term = omp * omp
    elif g == 1.0:
        pow_term = omp
    elif g == 0.0:
        pow_term = jnp.ones_like(omp)
    elif g == float(int(g)) and 0.0 < g <= 8.0:   # small integer gammas
        pow_term = omp
        for _ in range(int(g) - 1):
            pow_term = pow_term * omp
    else:
        pow_term = jnp.power(omp, g)

    focal = w * pow_term * logp                   # w already folds -alpha (and class weight)
    # Valid-row guard MUST stay in-kernel: it protects against NaN/Inf from
    # garbage rows of the (unpadded) overhanging last logits block.
    loss_ref[...] = jnp.where(t >= 0, focal, 0.0)


def _vmem_capacity_bytes() -> int:
    """Per-core VMEM capacity; conservative (v7x-sized) fallback."""
    try:
        return int(pltpu.get_tpu_info().vmem_capacity_bytes)
    except Exception:
        return 64 * 1024 * 1024


def _pick_tile_rows(n_rows, n_cols, in_itemsize, compute_itemsize, vmem_cap):
    """Row-tile sized by bytes of the in-kernel compute tile (~2-4 MiB)."""
    mult = {4: 8, 2: 16, 1: 32}.get(int(in_itemsize), 8)   # sublane granularity
    # 4 MiB compute tiles on 128-MiB parts (v5e/v6e), 2 MiB otherwise (v7x /
    # unknown).  Row cap keeps the (T,1) per-row intermediates (which cost
    # ~512*T bytes each in VMEM regardless of C) bounded for tiny C.
    budget = (4 << 20) if vmem_cap >= (100 << 20) else (2 << 20)
    rows = budget // max(1, n_cols * compute_itemsize)
    rows = max(mult, min(8192, (rows // mult) * mult))
    n_round = ((n_rows + mult - 1) // mult) * mult
    return min(rows, n_round), mult


def softmax_focal_loss(x, target, gamma=2.0, alpha=0.25, weight=None,
                       reduction="mean", tile_rows=None, bf16_compute=False):
    """Forward of SoftmaxFocalLoss. x: (N, C) float, target: (N,) int."""
    assert x.ndim == 2 and target.ndim == 1 and x.shape[0] == target.shape[0]
    N, C = x.shape
    in_itemsize = jnp.dtype(x.dtype).itemsize
    use_bf16 = bool(bf16_compute) and x.dtype == jnp.bfloat16
    compute_itemsize = 2 if use_bf16 else 4

    vmem_cap = _vmem_capacity_bytes()
    auto_rows, mult = _pick_tile_rows(N, C, in_itemsize, compute_itemsize, vmem_cap)
    if tile_rows is None:
        tile_rows = auto_rows
    else:
        tile_rows = max(mult, ((int(tile_rows) + mult - 1) // mult) * mult)
        n_round = ((N + mult - 1) // mult) * mult
        tile_rows = min(tile_rows, n_round)

    num_tiles = int(pl.cdiv(N, tile_rows))
    Np = num_tiles * tile_rows

    # Only the (tiny) per-row side inputs get padded; pad rows use target=-1.
    t_p = jnp.pad(target.astype(jnp.int32), (0, Np - N),
                  constant_values=-1).reshape(Np, 1)

    # Hoisted per-row effective weight: w_eff = -alpha * weight[target]
    # (just the constant -alpha when no class weights).  Trivial XLA gather of
    # N floats; removes a full-tile select + lane reduce from the kernel.
    if weight is None:
        w_rows = jnp.full((N,), -float(alpha), jnp.float32)
    else:
        assert weight.ndim == 1 and weight.shape[0] == C
        tgt_clip = jnp.clip(target.astype(jnp.int32), 0, C - 1)
        w_rows = (-float(alpha)) * jnp.take(weight.astype(jnp.float32), tgt_clip)
    w_p = jnp.pad(w_rows, (0, Np - N)).reshape(Np, 1)

    kernel = functools.partial(_softmax_focal_loss_kernel,
                               gamma=float(gamma), bf16_compute=use_bf16)

    # Generation-aware scoped-VMEM limit: ~3/4 of per-core VMEM
    # (48 MiB on v7x, 96 MiB on v5e/v6e), never below 32 MiB.
    vmem_limit = max(32 << 20, min(int(vmem_cap * 3 // 4), 96 << 20))

    per_sample = pl.pallas_call(
        kernel,
        out_shape=jax.ShapeDtypeStruct((Np, 1), jnp.float32),
        grid_spec=pltpu.PrefetchScalarGridSpec(
            num_scalar_prefetch=0,
            grid=(num_tiles,),
            in_specs=[
                pl.BlockSpec((tile_rows, C), lambda i: (i, 0)),   # logits (native dtype)
                pl.BlockSpec((tile_rows, 1), lambda i: (i, 0)),   # targets
                pl.BlockSpec((tile_rows, 1), lambda i: (i, 0)),   # -alpha * weight[target]
            ],
            out_specs=pl.BlockSpec((tile_rows, 1), lambda i: (i, 0)),
        ),
        compiler_params=pltpu.CompilerParams(
            dimension_semantics=("parallel",),   # no serial accumulator -> both TCs on v7x
            vmem_limit_bytes=int(vmem_limit)),
    )(x, t_p, w_p)

    if reduction == "none":
        return per_sample[:N, 0]
    total = jnp.sum(per_sample)                  # padded rows are exactly 0
    if reduction == "sum":
        return total
    if reduction == "mean":
        return total / jnp.float32(N)
    raise ValueError(f"unknown reduction: {reduction}")


class SoftmaxFocalLoss:
    """JAX/Pallas port of the PyTorch SoftmaxFocalLoss module (forward only)."""
    # TODO(synk): backward (softmax_focal_loss_backward) is not implemented.

    def __init__(self, gamma, alpha, weight=None, reduction="mean",
                 bf16_compute=False):
        self.gamma = float(gamma)
        self.alpha = float(alpha)
        self.weight = weight
        self.reduction = reduction
        self.bf16_compute = bool(bf16_compute)

    def __call__(self, x, target):
        return softmax_focal_loss(x, target, self.gamma, self.alpha,
                                  self.weight, self.reduction,
                                  bf16_compute=self.bf16_compute)


if __name__ == "__main__":
    key = jax.random.PRNGKey(0)
    k1, k2, k3 = jax.random.split(key, 3)

    N, C = 40, 128
    x = jax.random.normal(k1, (N, C), dtype=jnp.float32)
    target = jax.random.randint(k2, (N,), 0, C, dtype=jnp.int32)
    class_weight = 0.5 + jax.random.uniform(k3, (C,), dtype=jnp.float32)

    def ref_per_sample(x32, tgt, gamma, alpha, w):
        probs = jax.nn.softmax(x32, axis=1)
        p = probs[jnp.arange(x32.shape[0]), tgt]
        l = -alpha * (1.0 - p) ** gamma * jnp.log(jnp.maximum(p, _FLT_MIN))
        if w is not None:
            l = l * w[tgt]
        return l

    ref_per = ref_per_sample(x, target, 2.0, 0.25, class_weight)

    # Tolerance slightly loosened vs. a bit-exact softmax because the kernel
    # uses the EUP approximate reciprocal for p = num / denom.
    RTOL, ATOL = 5e-3, 1e-6

    # mean reduction via the module wrapper
    loss_mod = SoftmaxFocalLoss(gamma=2.0, alpha=0.25, weight=class_weight,
                                reduction="mean")
    out_mean = jax.block_until_ready(loss_mod(x, target))
    assert jnp.allclose(out_mean, jnp.sum(ref_per) / N, rtol=RTOL, atol=ATOL), (
        out_mean, jnp.sum(ref_per) / N)

    # 'none' and 'sum'
    out_none = jax.block_until_ready(
        softmax_focal_loss(x, target, 2.0, 0.25, class_weight, "none"))
    assert out_none.shape == (N,)
    assert jnp.allclose(out_none, ref_per, rtol=RTOL, atol=ATOL)
    out_sum = jax.block_until_ready(
        softmax_focal_loss(x, target, 2.0, 0.25, class_weight, "sum"))
    assert jnp.allclose(out_sum, jnp.sum(ref_per), rtol=RTOL, atol=ATOL)

    # multi-tile grid with an overhanging last logits block + no class weights
    out_small_tiles = jax.block_until_ready(
        softmax_focal_loss(x, target, 2.0, 0.25, None, "mean", tile_rows=16))
    ref_small = jnp.sum(ref_per_sample(x, target, 2.0, 0.25, None)) / N
    assert jnp.allclose(out_small_tiles, ref_small, rtol=RTOL, atol=ATOL)

    # integer gamma != 2 fast path
    out_g3 = jax.block_until_ready(
        softmax_focal_loss(x, target, 3.0, 0.5, class_weight, "mean"))
    ref_g3 = jnp.sum(ref_per_sample(x, target, 3.0, 0.5, class_weight)) / N
    assert jnp.allclose(out_g3, ref_g3, rtol=RTOL, atol=ATOL)

    # bf16 logits stay bf16 on the HBM->VMEM path (default f32 in-kernel compute)
    x_bf16 = x.astype(jnp.bfloat16)
    ref_bf16 = jnp.sum(ref_per_sample(x_bf16.astype(jnp.float32), target,
                                      2.0, 0.25, class_weight)) / N
    out_bf16 = jax.block_until_ready(
        softmax_focal_loss(x_bf16, target, 2.0, 0.25, class_weight, "mean"))
    assert jnp.allclose(out_bf16, ref_bf16, rtol=5e-3, atol=1e-4)

    # opt-in bf16 in-kernel compute path (bf16 VPU/EUP on v6e/v7x) — looser tol
    out_bf16_fast = jax.block_until_ready(
        softmax_focal_loss(x_bf16, target, 2.0, 0.25, class_weight, "mean",
                           bf16_compute=True))
    assert jnp.allclose(out_bf16_fast, ref_bf16, rtol=3e-2, atol=1e-3)

    print("KERNEL_OK")
</pallas_src>

<mosaic_0001>
module attributes {stable_mosaic.version = 11 : i64} {
  func.func @_softmax_focal_loss_kernel(%arg0: i32, %arg1: memref<40x128xf32, #tpu.memory_space<vmem>>, %arg2: memref<40x1xi32, #tpu.memory_space<vmem>>, %arg3: memref<40x1xf32, #tpu.memory_space<vmem>>, %arg4: memref<40x1xf32, #tpu.memory_space<vmem>>) attributes {dimension_semantics = [#tpu.dimension_semantics<parallel>], iteration_bounds = array<i64: 1>, scalar_prefetch = 0 : i64, scratch_operands = 0 : i64, tpu.core_type = #tpu.core_type<tc>, window_params = [{transform_indices = @transform_0, window_bounds = array<i64: 40, 128>}, {transform_indices = @transform_1, window_bounds = array<i64: 40, 1>}, {transform_indices = @transform_2, window_bounds = array<i64: 40, 1>}, {transform_indices = @transform_3, window_bounds = array<i64: 40, 1>}]} {
    %c0 = arith.constant 0 : index
    %c0_0 = arith.constant 0 : index
    %0 = vector.load %arg2[%c0, %c0_0] : memref<40x1xi32, #tpu.memory_space<vmem>>, vector<40x1xi32>
    %c0_1 = arith.constant 0 : index
    %c0_2 = arith.constant 0 : index
    %1 = vector.load %arg3[%c0_1, %c0_2] : memref<40x1xf32, #tpu.memory_space<vmem>>, vector<40x1xf32>
    %c0_3 = arith.constant 0 : index
    %c0_4 = arith.constant 0 : index
    %2 = vector.load %arg1[%c0_3, %c0_4] : memref<40x128xf32, #tpu.memory_space<vmem>>, vector<40x128xf32>
    %cst = arith.constant dense<0xFF800000> : vector<40xf32>
    %3 = vector.multi_reduction <maximumf>, %2, %cst [1] : vector<40x128xf32> to vector<40xf32>
    %4 = vector.shape_cast %3 : vector<40xf32> to vector<40x1xf32>
    %5 = vector.broadcast %4 : vector<40x1xf32> to vector<40x128xf32>
    %6 = arith.subf %2, %5 : vector<40x128xf32>
    %7 = math.exp %6 : vector<40x128xf32>
    %cst_5 = arith.constant dense<0.000000e+00> : vector<40xf32>
    %8 = vector.multi_reduction <add>, %7, %cst_5 [1] : vector<40x128xf32> to vector<40xf32>
    %9 = vector.shape_cast %8 : vector<40xf32> to vector<40x1xf32>
    %10 = tpu.iota {dimensions = array<i32: 1>} : vector<40x128xi32>
    %11 = vector.broadcast %0 : vector<40x1xi32> to vector<40x128xi32>
    %12 = arith.cmpi eq, %10, %11 : vector<40x128xi32>
    %cst_6 = arith.constant 0.000000e+00 : f32
    %13 = vector.broadcast %cst_6 : f32 to vector<40x128xf32>
    %14 = arith.select %12, %2, %13 : vector<40x128xi1>, vector<40x128xf32>
    %cst_7 = arith.constant dense<0.000000e+00> : vector<40xf32>
    %15 = vector.multi_reduction <add>, %14, %cst_7 [1] : vector<40x128xf32> to vector<40xf32>
    %16 = vector.shape_cast %15 : vector<40xf32> to vector<40x1xf32>
    %cst_8 = arith.constant 0.000000e+00 : f32
    %17 = vector.broadcast %cst_8 : f32 to vector<40x128xf32>
    %18 = arith.select %12, %7, %17 : vector<40x128xi1>, vector<40x128xf32>
    %cst_9 = arith.constant dense<0.000000e+00> : vector<40xf32>
    %19 = vector.multi_reduction <add>, %18, %cst_9 [1] : vector<40x128xf32> to vector<40xf32>
    %20 = vector.shape_cast %19 : vector<40xf32> to vector<40x1xf32>
    %21 = tpu.reciprocal %9 {approx = true} : vector<40x1xf32> -> vector<40x1xf32>
    %22 = arith.mulf %20, %21 : vector<40x1xf32>
    %23 = arith.subf %16, %4 : vector<40x1xf32>
    %24 = math.log %9 : vector<40x1xf32>
    %25 = arith.subf %23, %24 : vector<40x1xf32>
    %cst_10 = arith.constant -87.3365478 : f32
    %26 = vector.broadcast %cst_10 : f32 to vector<40x1xf32>
    %27 = arith.maximumf %25, %26 : vector<40x1xf32>
    %cst_11 = arith.constant 1.000000e+00 : f32
    %28 = vector.broadcast %cst_11 : f32 to vector<40x1xf32>
    %29 = arith.subf %28, %22 : vector<40x1xf32>
    %cst_12 = arith.constant 0.000000e+00 : f32
    %30 = vector.broadcast %cst_12 : f32 to vector<40x1xf32>
    %31 = arith.maximumf %29, %30 : vector<40x1xf32>
    %32 = arith.mulf %31, %31 : vector<40x1xf32>
    %33 = arith.mulf %1, %32 : vector<40x1xf32>
    %34 = arith.mulf %33, %27 : vector<40x1xf32>
    %c0_i32 = arith.constant 0 : i32
    %35 = vector.broadcast %c0_i32 : i32 to vector<40x1xi32>
    %36 = arith.cmpi sge, %0, %35 : vector<40x1xi32>
    %cst_13 = arith.constant 0.000000e+00 : f32
    %37 = vector.broadcast %cst_13 : f32 to vector<40x1xf32>
    %38 = arith.select %36, %34, %37 : vector<40x1xi1>, vector<40x1xf32>
    %c0_14 = arith.constant 0 : index
    %c0_15 = arith.constant 0 : index
    %39 = vector.load %arg4[%c0_14, %c0_15] : memref<40x1xf32, #tpu.memory_space<vmem>>, vector<40x1xf32>
    tpu.vector_store %arg4[%c0_14, %c0_15], %38 {strides = array<i32>} : memref<40x1xf32, #tpu.memory_space<vmem>>, vector<40x1xf32>,
    return
  }
  func.func @transform_0(%arg0: i32) -> (i32, i32) {
    %c0_i32 = arith.constant 0 : i32
    %c0_i32_0 = arith.constant 0 : i32
    return %arg0, %c0_i32 : i32, i32
  }
  func.func @transform_1(%arg0: i32) -> (i32, i32) {
    %c0_i32 = arith.constant 0 : i32
    %c0_i32_0 = arith.constant 0 : i32
    return %arg0, %c0_i32 : i32, i32
  }
  func.func @transform_2(%arg0: i32) -> (i32, i32) {
    %c0_i32 = arith.constant 0 : i32
    %c0_i32_0 = arith.constant 0 : i32
    return %arg0, %c0_i32 : i32, i32
  }
  func.func @transform_3(%arg0: i32) -> (i32, i32) {
    %c0_i32 = arith.constant 0 : i32
    %c0_i32_0 = arith.constant 0 : i32
    return %arg0, %c0_i32 : i32, i32
  }
}

</mosaic_0001>

<bundles_post_ra>
// kernel: tpu_custom_call.1
= control target key start
LH: loop header
LB: loop body
LE: loop exit
PB: predicated region body
PF: predicated region fallthrough
CT: control target
= control target key end

     0   :  { %v229_v2 = vmov 0   ;;  %v64_v13 = vlaneseq  ;;  %vm186_vm6 = vcmask 7168   ;;  %s373_s0 = inlined_call_operand.vmem [shape: f32[40,128], index: 0, kind: input, shape index: {}]   ;;  %s374_s1 = inlined_call_operand.vmem [shape: s32[40,1], index: 1, kind: input, shape index: {}]   ;;  %s375_s2 = inlined_call_operand.vmem [shape: f32[40,1], index: 2, kind: input, shape index: {}]   ;;  %s376_s3 = inlined_call_operand.vmem [shape: f32[40,1], index: 3, kind: output, shape index: {}]  }
   0x1   :  { %v26_v0 = vld [vmem:[%s373_s0 + $0x10] sm:$0xff]  ;;  %v24_v1 = vld [vmem:[%s373_s0] sm:$0xff]  ;;  %197 = vset.pattern.permute.xlu1 %v229_v2  ;;  %198 = vset.pattern.permute.xlu0 %v229_v2  ;;  %v259_v3 = vld [vmem:[%s373_s0 + $0x18] sm:$0xff] }
   0x2   :  { %33 = vmax.xlane.f32.xlu1 %v26_v0  ;;  %29 = vmax.xlane.f32.xlu0 %v24_v1  ;;  %v25_v4 = vld [vmem:[%s373_s0 + $0x8] sm:$0xff]  ;;  %v268_v5 = vld [vmem:[%s373_s0 + $0x20] sm:$0xff]  ;;  %v280_v7 = vld [vmem:[%s374_s1 + $0x10] sm:$0xff]  ;;  %v65_v18 = vand.u32 127, %v64_v13 }
   0x3   :  { %v274_v6 = vld [vmem:[%s374_s1] sm:$0xff]  ;;  %v286_v8 = vld [vmem:[%s374_s1 + $0x18] sm:$0xff]  ;;  %v291_v9 = vld [vmem:[%s374_s1 + $0x8] sm:$0xff]  ;;  %vm178_vm8 = vcmp.ge.s32.totalorder %v280_v7, 0 }
   0x4   :  { %v298_v10 = vld [vmem:[%s374_s1 + $0x20] sm:$0xff]  ;;  %v20_v2 = vld [vmem:[%s375_s2 + $0x8] sm:$0xff]  ;;  %vm177_vm5 = vcmp.ge.s32.totalorder %v291_v9, 0  ;;  %vm176_vm7 = vcmp.ge.s32.totalorder %v274_v6, 0  ;;  %vm179_vm10 = vcmp.ge.s32.totalorder %v286_v8, 0 }
   0x5   :  { %vm180_vm9 = vcmp.ge.s32.totalorder %v298_v10, 0 }
   0x6   :  { %35 = vmax.xlane.f32.xlu1 %v259_v3  ;;  %31 = vmax.xlane.f32.xlu0 %v25_v4 }
   0xa   :  { %37 = vmax.xlane.f32.xlu0 %v268_v5 }
  0x17   :  { %67 = vperm.xlu1 %197, %v274_v6  }
  0x1b   :  { %73 = vperm.xlu1 %197, %v280_v7  }
  0x1f   :  { %76 = vperm.xlu1 %197, %v286_v8  }
  0x20   :  { %70 = vperm.xlu0 %198, %v291_v9  }
  0x23   :  { %79 = vperm.xlu1 %197, %v298_v10  }
  0x8f   :  { %v301_v11 = vpop.xlane.xlu1 %33  ;;  %v303_v12 = vpop.xlane.xlu0 %29 }
  0x90   :  { %v39_v14 = vsub.f32 %v24_v1, %v303_v12  ;;  %v41_v19 = vsub.f32 %v26_v0, %v301_v11 }
  0x92   :  { %v44_v21 = vmul.f32 1.442695, %v39_v14  ;;  %v48_v24 = vmul.f32 1.442695, %v41_v19 }
  0x93   :  { %v306_v15 = vpop.xlane.xlu1 %35  ;;  %v308_v16 = vpop.xlane.xlu0 %31 }
  0x94   :  { %v40_v17 = vsub.f32 %v25_v4, %v308_v16  ;;  %v42_v23 = vsub.f32 %v259_v3, %v306_v15 }
  0x96   :  { %v46_v20 = vmul.f32 1.442695, %v40_v17  ;;  %v50_v27 = vmul.f32 1.442695, %v42_v23 }
  0x97   :  { %v68_v22 = vpop.permute.xlu1 %67  ;;  %v315_v26 = vpop.xlane.xlu0 %37 }
  0x98   :  { %vm81_vm0 = vcmp.eq.s32.totalorder %v65_v18, %v68_v22  ;;  %199 = vpow2.f32 %v46_v20  ;;  %v43_v28 = vsub.f32 %v268_v5, %v315_v26 }
  0x99   :  { %v86_v25 = vsel %vm81_vm0, %v24_v1, 0.0  ;;  %201 = vpow2.f32 %v44_v21 }
  0x9a   :  { %91 = vadd.xlane.f32.xlu0 %v86_v25  ;;  %203 = vpow2.f32 %v48_v24  ;;  %v52_v33 = vmul.f32 1.442695, %v43_v28 }
  0x9b   :  { %205 = vpow2.f32 %v50_v27  ;;  %v74_v30 = vpop.permute.xlu1 %73 }
  0x9c   :  { %vm83_vm2 = vcmp.eq.s32.totalorder %v65_v18, %v74_v30  ;;  %207 = vpow2.f32 %v52_v33 }
  0x9d   :  { %v88_v35 = vsel %vm83_vm2, %v26_v0, 0.0 }
  0x9f   :  { %v71_v29 = vpop.permute.xlu0 %70  ;;  %v77_v37 = vpop.permute.xlu1 %76 }
  0xa0   :  { %vm82_vm1 = vcmp.eq.s32.totalorder %v65_v18, %v71_v29  ;;  %vm84_vm3 = vcmp.eq.s32.totalorder %v65_v18, %v77_v37 }
  0xa1   :  { %v87_v31 = vsel %vm82_vm1, %v25_v4, 0.0  ;;  %v89_v47 = vsel %vm84_vm3, %v259_v3, 0.0 }
  0xa2   :  { %93 = vadd.xlane.f32.xlu1 %v87_v31  ;;  %v200_v32 = vpop.eup %199 }
  0xa3   :  { %56 = vadd.xlane.f32.xlu0 %v200_v32  ;;  %v202_v34 = vpop.eup %201  ;;  %v102_v39 = vsel %vm82_vm1, %v200_v32, 0.0  ;;  %v80_v41 = vpop.permute.xlu1 %79 }
  0xa4   :  { %v204_v36 = vpop.eup %203  ;;  %vm85_vm4 = vcmp.eq.s32.totalorder %v65_v18, %v80_v41  ;;  %v101_v44 = vsel %vm81_vm0, %v202_v34, 0.0 }
  0xa5   :  { %v206_v38 = vpop.eup %205  ;;  %v90_v43 = vsel %vm85_vm4, %v268_v5, 0.0  ;;  %v103_v45 = vsel %vm83_vm2, %v204_v36, 0.0 }
  0xa6   :  { %54 = vadd.xlane.f32.xlu1 %v202_v34  ;;  %v104_v40 = vsel %vm84_vm3, %v206_v38, 0.0  ;;  %v208_v42 = vpop.eup %207  ;;  %v19_v34 = vld [vmem:[%s375_s2] sm:$0xff] }
  0xa7   :  { %95 = vadd.xlane.f32.xlu0 %v88_v35  ;;  %v105_v46 = vsel %vm85_vm4, %v208_v42, 0.0 }
  0xaa   :  { %58 = vadd.xlane.f32.xlu1 %v204_v36 }
  0xab   :  { %108 = vadd.xlane.f32.xlu0 %v102_v39 }
  0xae   :  { %60 = vadd.xlane.f32.xlu1 %v206_v38 }
  0xaf   :  { %112 = vadd.xlane.f32.xlu0 %v104_v40 }
  0xb2   :  { %62 = vadd.xlane.f32.xlu1 %v208_v42 }
  0xb3   :  { %99 = vadd.xlane.f32.xlu0 %v90_v43 }
  0xb6   :  { %106 = vadd.xlane.f32.xlu1 %v101_v44 }
  0xba   :  { %110 = vadd.xlane.f32.xlu1 %v103_v45 }
  0xbe   :  { %114 = vadd.xlane.f32.xlu1 %v105_v46  ;;  %v21_v46 = vld [vmem:[%s375_s2 + $0x10] sm:$0xff] }
  0xc2   :  { %97 = vadd.xlane.f32.xlu1 %v89_v47 }
 0x127   :  { %v92_v48 = vpop.xlane.xlu0 %91 }
 0x12f   :  { %v94_v49 = vpop.xlane.xlu1 %93 }
 0x130   :  { %v57_v50 = vpop.xlane.xlu0 %56  ;;  %v127_v60 = vsub.f32 %v94_v49, %v308_v16  ;;  %v126_v16 = vsub.f32 %v92_v48, %v303_v12 }
 0x131   :  { %209 = vrcp.f32 %v57_v50 }
 0x132   :  { %211 = vlog2.f32 %v57_v50 }
 0x133   :  { %v55_v51 = vpop.xlane.xlu1 %54 }
 0x134   :  { %213 = vlog2.f32 %v55_v51  ;;  %v96_v52 = vpop.xlane.xlu0 %95 }
 0x135   :  { %215 = vrcp.f32 %v55_v51  ;;  %v128_v32 = vsub.f32 %v96_v52, %v301_v11 }
 0x137   :  { %v59_v53 = vpop.xlane.xlu1 %58 }
 0x138   :  { %217 = vlog2.f32 %v59_v53  ;;  %v109_v56 = vpop.xlane.xlu0 %108 }
 0x13b   :  { %v61_v54 = vpop.xlane.xlu1 %60  ;;  %v210_v55 = vpop.eup %209 }
 0x13c   :  { %219 = vrcp.f32 %v61_v54  ;;  %v212_v57 = vpop.eup %211  ;;  %v122_v58 = vmul.f32 %v210_v55, %v109_v56  ;;  %v113_v20 = vpop.xlane.xlu0 %112 }
 0x13d   :  { %221 = vrcp.f32 %v59_v53  ;;  %v134_v59 = vmul.f32 0.6931472, %v212_v57 }
 0x13e   :  { %v152_v61 = vsub.f32 1.0, %v122_v58  ;;  %v214_v63 = vpop.eup %213 }
 0x13f   :  { %v63_v62 = vpop.xlane.xlu1 %62  ;;  %v142_v0 = vsub.f32 %v127_v60, %v134_v59  ;;  %v216_v3 = vpop.eup %215  ;;  %v132_v4 = vmul.f32 0.6931472, %v214_v63  ;;  %v22_v60 = vld [vmem:[%s375_s2 + $0x18] sm:$0xff] }
 0x140   :  { %223 = vrcp.f32 %v63_v62  ;;  %v157_v1 = vmax.f32 %v152_v61, 0.0  ;;  %v100_v40 = vpop.xlane.xlu0 %99 }
 0x141   :  { %225 = vlog2.f32 %v63_v62  ;;  %v147_v18 = vmax.f32 %v142_v0, -87.33655  ;;  %v141_v24 = vsub.f32 %v126_v16, %v132_v4  ;;  %v130_v48 = vsub.f32 %v100_v40, %v315_v26  ;;  %v23_v26 = vld [vmem:[%s375_s2 + $0x20] sm:$0xff] }
 0x142   :  { %v162_v5 = vmul.f32 %v157_v1, %v157_v1  ;;  %v218_v14 = vpop.eup %217  ;;  %227 = vlog2.f32 %v61_v54 }
 0x143   :  { %v107_v13 = vpop.xlane.xlu1 %106  ;;  %v136_v25 = vmul.f32 0.6931472, %v218_v14  ;;  %v146_v38 = vmax.f32 %v141_v24, -87.33655 }
 0x144   :  { %v121_v17 = vmul.f32 %v216_v3, %v107_v13  ;;  %v167_v19 = vmul.f32 %v162_v5, %v20_v2 }
 0x145   :  { %v143_v39 = vsub.f32 %v128_v32, %v136_v25 }
 0x146   :  { %v220_v21 = vpop.eup %219  ;;  %v151_v22 = vsub.f32 1.0, %v121_v17  ;;  %v172_v27 = vmul.f32 %v167_v19, %v147_v18 }
 0x147   :  { %v222_v23 = vpop.eup %221  ;;  %v124_v28 = vmul.f32 %v220_v21, %v113_v20  ;;  %v111_v29 = vpop.xlane.xlu1 %110  ;;  %v148_v52 = vmax.f32 %v143_v39, -87.33655 }
 0x148   :  { %v156_v30 = vmax.f32 %v151_v22, 0.0  ;;  %v123_v31 = vmul.f32 %v222_v23, %v111_v29  ;;  %v182_v33 = vsel %vm177_vm5, %v172_v27, 0.0 }
 0x149   :  { %v154_v12 = vsub.f32 1.0, %v124_v28  ;;  %188 = vst.msk [vmem:[%s376_s3 + $0x8] sm:$0xff] %vm186_vm6, %v182_v33 }
 0x14a   :  { %v224_v35 = vpop.eup %223  ;;  %v161_v9 = vmul.f32 %v156_v30, %v156_v30  ;;  %v153_v36 = vsub.f32 1.0, %v123_v31 }
 0x14b   :  { %v226_v37 = vpop.eup %225  ;;  %v115_v41 = vpop.xlane.xlu1 %114  ;;  %v159_v45 = vmax.f32 %v154_v12, 0.0 }
 0x14c   :  { %v140_v11 = vmul.f32 0.6931472, %v226_v37  ;;  %v166_v42 = vmul.f32 %v161_v9, %v19_v34  ;;  %v158_v43 = vmax.f32 %v153_v36, 0.0  ;;  %v125_v44 = vmul.f32 %v224_v35, %v115_v41  ;;  %v228_v47 = vpop.eup %227 }
 0x14d   :  { %v164_v6 = vmul.f32 %v159_v45, %v159_v45  ;;  %v138_v58 = vmul.f32 0.6931472, %v228_v47 }
 0x14e   :  { %v171_v49 = vmul.f32 %v166_v42, %v146_v38  ;;  %v163_v50 = vmul.f32 %v158_v43, %v158_v43  ;;  %v155_v51 = vsub.f32 1.0, %v125_v44  ;;  %v145_v54 = vsub.f32 %v130_v48, %v140_v11 }
 0x14f   :  { %v98_v53 = vpop.xlane.xlu1 %97  ;;  %v169_v2 = vmul.f32 %v164_v6, %v22_v60 }
 0x150   :  { %v181_v55 = vsel %vm176_vm7, %v171_v49, 0.0  ;;  %v168_v56 = vmul.f32 %v163_v50, %v21_v46  ;;  %v160_v57 = vmax.f32 %v155_v51, 0.0  ;;  %v129_v59 = vsub.f32 %v98_v53, %v306_v15 }
 0x151   :  { %187 = vst.msk [vmem:[%s376_s3] sm:$0xff] %vm186_vm6, %v181_v55  ;;  %v150_v63 = vmax.f32 %v145_v54, -87.33655 }
 0x152   :  { %v173_v61 = vmul.f32 %v168_v56, %v148_v52  ;;  %v165_v62 = vmul.f32 %v160_v57, %v160_v57  ;;  %v144_v7 = vsub.f32 %v129_v59, %v138_v58 }
 0x154   :  { %v183_v0 = vsel %vm178_vm8, %v173_v61, 0.0  ;;  %v170_v1 = vmul.f32 %v165_v62, %v23_v26  ;;  %v149_v3 = vmax.f32 %v144_v7, -87.33655 }
 0x155   :  { %189 = vst.msk [vmem:[%s376_s3 + $0x10] sm:$0xff] %vm186_vm6, %v183_v0 }
 0x156   :  { %v175_v15 = vmul.f32 %v170_v1, %v150_v63  ;;  %v174_v4 = vmul.f32 %v169_v2, %v149_v3 }
 0x158   :  { %v185_v5 = vsel %vm180_vm9, %v175_v15, 0.0  ;;  %v184_v13 = vsel %vm179_vm10, %v174_v4, 0.0 }
 0x159   :  { %191 = vst.msk [vmem:[%s376_s3 + $0x20] sm:$0xff] %vm186_vm6, %v185_v5  ;;  %190 = vst.msk [vmem:[%s376_s3 + $0x18] sm:$0xff] %vm186_vm6, %v184_v13 }

</bundles_post_ra>
